<compile_context>
chip_gen: v7x
topology: tpu7x:2x2x1
jax: 0.10.0
libtpu: 0.0.40
codegen_flags: <defaults>
</compile_context>

<pallas_src>
import jax
import jax.numpy as jnp
from jax.experimental import pallas as pl
from jax.experimental.pallas import tpu as pltpu


def mlp_kernel(x_ref, pk_ref, w2_ref, b3_ref, o_ref):
    x_row = x_ref[...]                                    # [1, block_n] f32

    # Static slices of the packed [hidden_p, 4] parameter tile.
    w1 = pk_ref[:, 0:1]                                   # [Hp, 1]
    b1 = pk_ref[:, 1:2]                                   # [Hp, 1]
    b2 = pk_ref[:, 2:3]                                   # [Hp, 1]
    w3 = pk_ref[:, 3:4]                                   # [Hp, 1]

    # Layer 1 (K=1): VPU broadcast outer product + ReLU; cast to bf16 for MXU.
    h1 = jnp.maximum(w1 * x_row + b1, 0.0).astype(jnp.bfloat16)    # [Hp, block_n]

    # Layer 2: the only real matmul -> MXU, bf16 operands, f32 accumulation.
    h2 = jnp.dot(w2_ref[...].astype(jnp.bfloat16), h1,
                 preferred_element_type=jnp.float32)               # [Hp, block_n]

    # Layer-2 epilogue fused with layer 3 (N=1): bias + ReLU, scale by w3,
    # sublane (XLU) reduce -> lane-dense [1, block_n] output row.
    y = jnp.sum(w3 * jnp.maximum(h2 + b2, 0.0), axis=0, keepdims=True)
    o_ref[...] = (y + b3_ref[0]).astype(o_ref.dtype)


def debug_mlp_forward(x, params, *, max_block_n=2048, core_parallel=False):
    """x: [N, 1] float32. params: dict from init_params (hidden already padded)."""
    n, in_dim = x.shape
    assert in_dim == 1
    hidden_p = params["w2"].shape[0]

    # Batch lives on lanes -> round up to a multiple of 128.  One grid step
    # whenever the padded batch fits in a single block; split only above
    # max_block_n (per-step fixed cost dominates this kernel otherwise).
    padded_n = max(128, -(-n // 128) * 128)
    if padded_n <= max_block_n:
        block_n = padded_n
    else:
        block_n = max_block_n
        padded_n = -(-n // block_n) * block_n
    steps = padded_n // block_n

    x_flat = x[:, 0]
    if padded_n != n:
        # TODO(synk): for very large N pad only the trailing tile instead of a
        # full-array jnp.pad copy (irrelevant at small/medium batch sizes).
        x_flat = jnp.pad(x_flat, (0, padded_n - n))
    x_row = x_flat[None, :]                               # [1, padded_n]

    if steps == 1:
        dims = ("arbitrary",)                             # nothing to shard
    elif core_parallel:
        dims = (pltpu.CORE_PARALLEL,)                     # v7x: use both TensorCores
    else:
        dims = ("parallel",)

    # Constant-index weight tiles are fetched once -> no double-buffering.
    const_kw = dict(pipeline_mode=pl.Buffered(1))

    out = pl.pallas_call(
        mlp_kernel,
        out_shape=jax.ShapeDtypeStruct((1, padded_n), jnp.float32),
        grid_spec=pltpu.PrefetchScalarGridSpec(
            num_scalar_prefetch=0,
            grid=(steps,),
            in_specs=[
                pl.BlockSpec((1, block_n), lambda i: (0, i)),               # x row tile
                pl.BlockSpec((hidden_p, 4), lambda i: (0, 0), **const_kw),  # packed w1|b1|b2|w3
                pl.BlockSpec((hidden_p, hidden_p), lambda i: (0, 0),
                             **const_kw),                                   # W2 [out, in]
                pl.BlockSpec(memory_space=pltpu.MemorySpace.SMEM),          # b3 scalar
            ],
            out_specs=pl.BlockSpec((1, block_n), lambda i: (0, i)),
        ),
        compiler_params=pltpu.CompilerParams(dimension_semantics=dims),
    )(x_row, params["packed"], params["w2"], params["b3"])

    return out[:, :n].T                                   # back to [N, 1]


def init_params(key, hidden_dim=50, pad_multiple=64):
    """Mirrors DebugMLP.__init__ (kaiming_uniform relu + zero bias for lin1/lin2,
    PyTorch default init for lin3).  Stored in kernel layout: hidden zero-padded
    to a multiple of 64 (padding leaves the math identical) and the four small
    column params packed into a single [hidden_p, 4] array."""
    hidden_p = -(-hidden_dim // pad_multiple) * pad_multiple
    k1, k2, k3, k3b = jax.random.split(key, 4)

    def pad_col(col):  # [h, 1] -> [hidden_p, 1]
        return jnp.pad(col, ((0, hidden_p - col.shape[0]), (0, 0)))

    # lin1: weight [hidden, 1], kaiming uniform (relu), fan_in = 1
    bound1 = jnp.sqrt(2.0) * jnp.sqrt(3.0 / 1.0)
    w1 = pad_col(jax.random.uniform(k1, (hidden_dim, 1), jnp.float32, -bound1, bound1))
    b1 = jnp.zeros((hidden_p, 1), jnp.float32)

    # lin2: weight [hidden, hidden] ([out, in]), kaiming uniform (relu), fan_in = hidden
    bound2 = jnp.sqrt(2.0) * jnp.sqrt(3.0 / hidden_dim)
    w2 = jax.random.uniform(k2, (hidden_dim, hidden_dim), jnp.float32, -bound2, bound2)
    w2 = jnp.pad(w2, ((0, hidden_p - hidden_dim), (0, hidden_p - hidden_dim)))
    b2 = jnp.zeros((hidden_p, 1), jnp.float32)

    # lin3: PyTorch default Linear init, uniform +-1/sqrt(fan_in=hidden)
    bound3 = 1.0 / jnp.sqrt(hidden_dim)
    w3 = pad_col(jax.random.uniform(k3, (hidden_dim, 1), jnp.float32, -bound3, bound3))
    b3 = jax.random.uniform(k3b, (1,), jnp.float32, -bound3, bound3)

    packed = jnp.concatenate([w1, b1, b2, w3], axis=1)    # [hidden_p, 4]
    return {"packed": packed, "w2": w2, "b3": b3}


def reference_forward(x, p):
    """Pure-JAX reference.  Padded rows/cols are zero so this equals the original
    50-wide module; the layer-2 dot uses the same bf16-operand / f32-accumulate
    rounding as the kernel (which matches the default TPU matmul precision).
    For exact f32 parity with a CPU PyTorch run, use precision=HIGHEST instead."""
    w1 = p["packed"][:, 0]
    b1 = p["packed"][:, 1]
    b2 = p["packed"][:, 2]
    w3 = p["packed"][:, 3]
    h1 = jnp.maximum(x * w1[None, :] + b1[None, :], 0.0)            # [N, Hp] exact f32 (K=1)
    h2 = jnp.dot(h1.astype(jnp.bfloat16), p["w2"].T.astype(jnp.bfloat16),
                 preferred_element_type=jnp.float32)
    h2 = jnp.maximum(h2 + b2[None, :], 0.0)
    return jnp.sum(h2 * w3[None, :], axis=1, keepdims=True) + p["b3"][0]


if __name__ == "__main__":
    key = jax.random.PRNGKey(0)
    kx, kp = jax.random.split(key)

    hidden_dim = 50
    batch = 200                       # pads to 256 lanes -> a single grid step
    x = jax.random.uniform(kx, (batch, 1), jnp.float32,
                           -2.0 * jnp.pi, 2.0 * jnp.pi)
    params = init_params(kp, hidden_dim)

    out = jax.block_until_ready(debug_mlp_forward(x, params))

    ref = reference_forward(x, params)
    assert out.shape == (batch, 1)
    assert jnp.allclose(out, ref, atol=1e-4, rtol=1e-4), \
        float(jnp.max(jnp.abs(out - ref)))

    print("KERNEL_OK")
</pallas_src>

<mosaic_0001>
module attributes {stable_mosaic.version = 11 : i64} {
  func.func @mlp_kernel(%arg0: i32, %arg1: memref<1x256xf32, #tpu.memory_space<vmem>>, %arg2: memref<64x4xf32, #tpu.memory_space<vmem>>, %arg3: memref<64x64xf32, #tpu.memory_space<vmem>>, %arg4: memref<1xf32, #tpu.memory_space<smem>>, %arg5: memref<1x256xf32, #tpu.memory_space<vmem>>) attributes {dimension_semantics = [#tpu.dimension_semantics<arbitrary>], iteration_bounds = array<i64: 1>, scalar_prefetch = 0 : i64, scratch_operands = 0 : i64, tpu.core_type = #tpu.core_type<tc>, window_params = [{transform_indices = @transform_0, window_bounds = array<i64: 1, 256>}, {pipeline_mode = #tpu.pipeline_mode<synchronous>, transform_indices = @transform_1, window_bounds = array<i64: 64, 4>}, {pipeline_mode = #tpu.pipeline_mode<synchronous>, transform_indices = @transform_2, window_bounds = array<i64: 64, 64>}, {transform_indices = @transform_3, window_bounds = array<i64: 1>}, {transform_indices = @transform_4, window_bounds = array<i64: 1, 256>}]} {
    %c0 = arith.constant 0 : index
    %c0_0 = arith.constant 0 : index
    %0 = vector.load %arg1[%c0, %c0_0] : memref<1x256xf32, #tpu.memory_space<vmem>>, vector<1x256xf32>
    %c0_1 = arith.constant 0 : index
    %c0_2 = arith.constant 0 : index
    %1 = vector.load %arg2[%c0_1, %c0_2] : memref<64x4xf32, #tpu.memory_space<vmem>>, vector<64x1xf32>
    %c0_3 = arith.constant 0 : index
    %c1 = arith.constant 1 : index
    %2 = vector.load %arg2[%c0_3, %c1] : memref<64x4xf32, #tpu.memory_space<vmem>>, vector<64x1xf32>
    %c0_4 = arith.constant 0 : index
    %c2 = arith.constant 2 : index
    %3 = vector.load %arg2[%c0_4, %c2] : memref<64x4xf32, #tpu.memory_space<vmem>>, vector<64x1xf32>
    %c0_5 = arith.constant 0 : index
    %c3 = arith.constant 3 : index
    %4 = vector.load %arg2[%c0_5, %c3] : memref<64x4xf32, #tpu.memory_space<vmem>>, vector<64x1xf32>
    %5 = vector.broadcast %1 : vector<64x1xf32> to vector<64x256xf32>
    %6 = vector.broadcast %0 : vector<1x256xf32> to vector<64x256xf32>
    %7 = arith.mulf %5, %6 : vector<64x256xf32>
    %8 = vector.broadcast %2 : vector<64x1xf32> to vector<64x256xf32>
    %9 = arith.addf %7, %8 : vector<64x256xf32>
    %cst = arith.constant 0.000000e+00 : f32
    %10 = vector.broadcast %cst : f32 to vector<64x256xf32>
    %11 = arith.maximumf %9, %10 : vector<64x256xf32>
    %12 = arith.truncf %11 : vector<64x256xf32> to vector<64x256xbf16>
    %c0_6 = arith.constant 0 : index
    %c0_7 = arith.constant 0 : index
    %13 = vector.load %arg3[%c0_6, %c0_7] : memref<64x64xf32, #tpu.memory_space<vmem>>, vector<64x64xf32>
    %14 = arith.truncf %13 : vector<64x64xf32> to vector<64x64xbf16>
    %cst_8 = arith.constant dense<0.000000e+00> : vector<64x256xf32>
    %15 = tpu.matmul %14, %12, %cst_8 {dimension_numbers = #tpu.dot_dimension_numbers<[1], [0], [0], [1], [0, 0, 1, 1], [], []>} : vector<64x64xbf16>, vector<64x256xbf16>, vector<64x256xf32> -> vector<64x256xf32>
    %16 = vector.broadcast %3 : vector<64x1xf32> to vector<64x256xf32>
    %17 = arith.addf %15, %16 : vector<64x256xf32>
    %cst_9 = arith.constant 0.000000e+00 : f32
    %18 = vector.broadcast %cst_9 : f32 to vector<64x256xf32>
    %19 = arith.maximumf %17, %18 : vector<64x256xf32>
    %20 = vector.broadcast %4 : vector<64x1xf32> to vector<64x256xf32>
    %21 = arith.mulf %20, %19 : vector<64x256xf32>
    %cst_10 = arith.constant dense<0.000000e+00> : vector<256xf32>
    %22 = vector.multi_reduction <add>, %21, %cst_10 [0] : vector<64x256xf32> to vector<256xf32>
    %23 = vector.shape_cast %22 : vector<256xf32> to vector<1x256xf32>
    %c0_11 = arith.constant 0 : index
    %24 = memref.load %arg4[%c0_11] : memref<1xf32, #tpu.memory_space<smem>>
    %25 = vector.broadcast %24 : f32 to vector<1x256xf32>
    %26 = arith.addf %23, %25 : vector<1x256xf32>
    %c0_12 = arith.constant 0 : index
    %c0_13 = arith.constant 0 : index
    %27 = vector.load %arg5[%c0_12, %c0_13] : memref<1x256xf32, #tpu.memory_space<vmem>>, vector<1x256xf32>
    tpu.vector_store %arg5[%c0_12, %c0_13], %26 {strides = array<i32>} : memref<1x256xf32, #tpu.memory_space<vmem>>, vector<1x256xf32>,
    return
  }
  func.func @transform_0(%arg0: i32) -> (i32, i32) {
    %c0_i32 = arith.constant 0 : i32
    %c0_i32_0 = arith.constant 0 : i32
    return %c0_i32, %arg0 : i32, i32
  }
  func.func @transform_1(%arg0: i32) -> (i32, i32) {
    %c0_i32 = arith.constant 0 : i32
    %c0_i32_0 = arith.constant 0 : i32
    %c0_i32_1 = arith.constant 0 : i32
    return %c0_i32, %c0_i32_0 : i32, i32
  }
  func.func @transform_2(%arg0: i32) -> (i32, i32) {
    %c0_i32 = arith.constant 0 : i32
    %c0_i32_0 = arith.constant 0 : i32
    %c0_i32_1 = arith.constant 0 : i32
    return %c0_i32, %c0_i32_0 : i32, i32
  }
  func.func @transform_3(%arg0: i32) -> i32 {
    %c0_i32 = arith.constant 0 : i32
    %c0_i32_0 = arith.constant 0 : i32
    return %c0_i32 : i32
  }
  func.func @transform_4(%arg0: i32) -> (i32, i32) {
    %c0_i32 = arith.constant 0 : i32
    %c0_i32_0 = arith.constant 0 : i32
    return %c0_i32, %arg0 : i32, i32
  }
}

</mosaic_0001>

<bundles_post_ra>
// kernel: tpu_custom_call.1
= control target key start
LH: loop header
LB: loop body
LE: loop exit
PB: predicated region body
PF: predicated region fallthrough
CT: control target
= control target key end

     0   :  { %v487_v2 = vmov 1   ;;  %s619_s0 = inlined_call_operand.vmem [shape: f32[1,256], index: 0, kind: input, shape index: {}]   ;;  %s620_s1 = inlined_call_operand.vmem [shape: f32[64,4], index: 1, kind: input, shape index: {}]   ;;  %s621_s2 = inlined_call_operand.vmem [shape: f32[64,64], index: 2, kind: input, shape index: {}]   ;;  %s622_s3 = inlined_call_operand.<no memory space> [shape: f32[1], index: 3, kind: input, shape index: {}]   ;;  %s623_s4 = inlined_call_operand.hbm [shape: f32[1,256], index: 4, kind: output, shape index: {}]  }
   0x1   :  { %v23_v0 = vld [vmem:[%s620_s1 + $0x10] sm:$0xff]  ;;  %v21_v1 = vld [vmem:[%s620_s1] sm:$0xff]  ;;  %449 = vset.pattern.permute.xlu0 %v487_v2  ;;  %447 = vset.pattern.permute.xlu1 %v487_v2 }
   0x2   :  { %105 = vperm.xlu0 %449, %v23_v0   ;;  %97 = vperm.xlu1 %447, %v21_v1  }
   0x3   :  { %10 = vsyncpa [#allocation4], 0  ;;  %v22_v3 = vld [vmem:[%s620_s1 + $0x8] sm:$0xff]  ;;  %v488_v4 = vmov 0   ;;  %v24_v5 = vld [vmem:[%s620_s1 + $0x18] sm:$0xff]  ;;  %v489_v10 = vmov 2   ;;  %v70_v12 = vlaneseq }
   0x4   :  { %257 = vmatprep.mubr.bf16.mxu0 %v488_v4  ;;  %277 = vmatprep.mubr.bf16.mxu1 %v488_v4  ;;  %v26_v6 = vld [vmem:[%s620_s1 + $0x28] sm:$0xff]  ;;  %v25_v7 = vld [vmem:[%s620_s1 + $0x20] sm:$0xff]  ;;  %v27_v8 = vld [vmem:[%s620_s1 + $0x30] sm:$0xff]  ;;  %v490_v11 = vmov 3   ;;  %vm212_vm0 = vcmask 523264   ;;  %s492_s22 = smov [#allocation3]  }
   0x5   :  { %v28_v9 = vld [vmem:[%s620_s1 + $0x38] sm:$0xff]  ;;  %v549_v13 = vshrl.u32 %v70_v12, 7  ;;  %v20_v16 = vld [vmem:[%s619_s0] sm:$0x3]  ;;  %s421_s23 = sshll.u32 %s492_s22, 4  ;;  %vm412_vm1 = vcmp.lt.s32.totalorder %v70_v12, 256  ;;  %s422_s23 = int_to_ptr.vmem [resolvable:$true] %s421_s23 }
   0x6   :  { %450 = vset.pattern.permute.xlu0 %v488_v4  ;;  %101 = vperm.xlu1 %447, %v22_v3   ;;  %s463_s24 = scalar_lea.vmem %s422_s23, 32  ;;  %p468_p1 = scmp.lt.s32.totalorder %s422_s23, %s422_s23 }
   0x7   :  { %31 = vperm.xlu0 %450, %v21_v1   ;;  %v72_v14 = vsub.s32 0, %v549_v13  ;;  %v76_v15 = vsub.s32 1, %v549_v13  ;;  %p464_p0 = scmp.ne.s32.totalorder %s422_s23, %s463_s24  ;;  %p469_p2 = scmp.lt.s32.totalorder %s463_s24, %s463_s24 }
   0x9   :  { %v556_v19 = vrot.slane %v20_v16, %v72_v14  ;;  %v558_v20 = vrot.slane %v20_v16, %v76_v15  ;;  %p470_p3 = por %p469_p2, %p468_p1 }
   0xa   :  { %448 = vset.pattern.permute.xlu1 %v488_v4 }
   0xb   :  { %36 = vperm.xlu0 %450, %v22_v3   ;;  %46 = vperm.xlu1 %448, %v24_v5   ;;  %p471_p4 = pnand %p470_p3, %p464_p0 }
   0xf   :  { %41 = vperm.xlu0 %450, %v23_v0   ;;  %451 = vset.pattern.permute.xlu1 %v487_v2 }
  0x10   :  { %109 = vperm.xlu1 %451, %v24_v5  }
  0x13   :  { %56 = vperm.xlu0 %450, %v26_v6  }
  0x14   :  { %452 = vset.pattern.permute.xlu1 %v488_v4 }
  0x15   :  { %51 = vperm.xlu1 %452, %v25_v7  }
  0x17   :  { %61 = vperm.xlu0 %450, %v27_v8  }
  0x19   :  { %453 = vset.pattern.permute.xlu1 %v487_v2 }
  0x1a   :  { %113 = vperm.xlu1 %453, %v25_v7  }
  0x1b   :  { %455 = vset.pattern.permute.xlu0 %v487_v2 }
  0x1c   :  { %121 = vperm.xlu0 %455, %v27_v8  }
  0x1e   :  { %117 = vperm.xlu1 %453, %v26_v6  }
  0x20   :  { %458 = vset.pattern.permute.xlu0 %v489_v10 }
  0x21   :  { %185 = vperm.xlu0 %458, %v22_v3  }
  0x22   :  { %454 = vset.pattern.permute.xlu1 %v488_v4 }
  0x23   :  { %66 = vperm.xlu1 %454, %v28_v9  }
  0x25   :  { %459 = vset.pattern.permute.xlu0 %v490_v11 }
  0x26   :  { %315 = vperm.xlu0 %459, %v21_v1  }
  0x27   :  { %456 = vset.pattern.permute.xlu1 %v487_v2 }
  0x28   :  { %125 = vperm.xlu1 %456, %v28_v9  }
  0x2a   :  { %323 = vperm.xlu0 %459, %v23_v0  }
  0x2c   :  { %457 = vset.pattern.permute.xlu1 %v489_v10 }
  0x2d   :  { %181 = vperm.xlu1 %457, %v21_v1  }
  0x2e   :  { %327 = vperm.xlu0 %459, %v24_v5  }
  0x31   :  { %189 = vperm.xlu1 %457, %v23_v0  }
  0x32   :  { %331 = vperm.xlu0 %459, %v25_v7  }
  0x35   :  { %193 = vperm.xlu1 %457, %v24_v5  }
  0x36   :  { %335 = vperm.xlu0 %459, %v26_v6  }
  0x39   :  { %460 = vset.pattern.permute.xlu1 %v490_v11 }
  0x3a   :  { %319 = vperm.xlu1 %460, %v22_v3   ;;  %343 = vperm.xlu0 %459, %v28_v9  }
  0x3e   :  { %461 = vset.pattern.permute.xlu1 %v489_v10 }
  0x3f   :  { %197 = vperm.xlu1 %461, %v25_v7  }
  0x43   :  { %201 = vperm.xlu1 %461, %v26_v6  }
  0x47   :  { %205 = vperm.xlu1 %461, %v27_v8  }
  0x4b   :  { %209 = vperm.xlu1 %461, %v28_v9  }
  0x4f   :  { %462 = vset.pattern.permute.xlu1 %v490_v11 }
  0x50   :  { %339 = vperm.xlu1 %462, %v27_v8  }
  0x81   :  { %v98_v17 = vpop.permute.xlu1 %97  ;;  %v106_v18 = vpop.permute.xlu0 %105 }
  0x85   :  { %v102_v21 = vpop.permute.xlu1 %101 }
  0x86   :  { %v32_v22 = vpop.permute.xlu0 %31 }
  0x87   :  { %v80_v23 = vmul.f32 %v556_v19, %v32_v22  ;;  %v81_v24 = vmul.f32 %v558_v20, %v32_v22 }
  0x89   :  { %v128_v25 = vadd.f32 %v98_v17, %v80_v23  ;;  %v129_v26 = vadd.f32 %v98_v17, %v81_v24 }
  0x8a   :  { %v37_v27 = vpop.permute.xlu0 %36  ;;  %v47_v28 = vpop.permute.xlu1 %46 }
  0x8b   :  { %v82_v29 = vmul.f32 %v556_v19, %v37_v27  ;;  %v83_v30 = vmul.f32 %v558_v20, %v37_v27  ;;  %v86_v33 = vmul.f32 %v556_v19, %v47_v28  ;;  %v87_v34 = vmul.f32 %v558_v20, %v47_v28 }
  0x8c   :  { %v145_v36 = vmax.f32 %v129_v26, 0.0  ;;  %v144_v37 = vmax.f32 %v128_v25, 0.0 }
  0x8d   :  { %v130_v31 = vadd.f32 %v102_v21, %v82_v29  ;;  %v131_v32 = vadd.f32 %v102_v21, %v83_v30  ;;  %v168_v30 = vld [vmem:[%s621_s2] sm:$0xff] }
  0x8e   :  { %v42_v35 = vpop.permute.xlu0 %41 }
  0x8f   :  { %v84_v38 = vmul.f32 %v556_v19, %v42_v35  ;;  %v85_v39 = vmul.f32 %v558_v20, %v42_v35  ;;  %v110_v40 = vpop.permute.xlu1 %109  ;;  %v147_v41 = vmax.f32 %v131_v32, 0.0  ;;  %v146_v42 = vmax.f32 %v130_v31, 0.0  ;;  %v169_v31 = vld [vmem:[%s621_s2 + $0x8] sm:$0xff] }
  0x90   :  { %v134_v43 = vadd.f32 %v110_v40, %v86_v33  ;;  %v135_v44 = vadd.f32 %v110_v40, %v87_v34  ;;  %v176_v34 = vpack.c.bf16 %v169_v31, %v168_v30 }
  0x91   :  { %v132_v45 = vadd.f32 %v106_v18, %v84_v38  ;;  %v133_v46 = vadd.f32 %v106_v18, %v85_v39  ;;  %v161_v47 = vpack.c.bf16 %v147_v41, %v145_v36  ;;  %v160_v48 = vpack.c.bf16 %v146_v42, %v144_v37  ;;  %v170_v36 = vld [vmem:[%s621_s2 + $0x10] sm:$0xff]  ;;  %v171_v37 = vld [vmem:[%s621_s2 + $0x18] sm:$0xff] }
  0x92   :  { %v150_v49 = vmax.f32 %v134_v43, 0.0  ;;  %v151_v50 = vmax.f32 %v135_v44, 0.0  ;;  %v57_v56 = vpop.permute.xlu0 %56  ;;  %v174_v38 = vld [vmem:[%s621_s2 + $0x30] sm:$0xff]  ;;  %v175_v39 = vld [vmem:[%s621_s2 + $0x38] sm:$0xff]  ;;  %v177_v40 = vpack.c.bf16 %v171_v37, %v170_v36 }
  0x93   :  { %v148_v51 = vmax.f32 %v132_v45, 0.0  ;;  %v149_v52 = vmax.f32 %v133_v46, 0.0  ;;  %225 = vmatprep.subr.bf16.mxu0 %v161_v47  ;;  %433 = vmatprep.subr.bf16.mxu1 %v161_v47  ;;  %v90_v60 = vmul.f32 %v556_v19, %v57_v56  ;;  %v91_v61 = vmul.f32 %v558_v20, %v57_v56 }
  0x94   :  { %v52_v53 = vpop.permute.xlu1 %51  ;;  %226 = vmatpush1.bf16.msra.mxu0 %v160_v48  ;;  %437 = vmatpush1.bf16.msra.mxu1 %v160_v48  ;;  %v179_v41 = vpack.c.bf16 %v175_v39, %v174_v38 }
  0x95   :  { %v163_v54 = vpack.c.bf16 %v151_v50, %v149_v52  ;;  %v162_v55 = vpack.c.bf16 %v150_v49, %v148_v51  ;;  %v88_v58 = vmul.f32 %v556_v19, %v52_v53  ;;  %v89_v59 = vmul.f32 %v558_v20, %v52_v53 }
  0x96   :  { %v62_v0 = vpop.permute.xlu0 %61 }
  0x97   :  { %227 = vmatprep.subr.bf16.mxu0 %v163_v54  ;;  %434 = vmatprep.subr.bf16.mxu1 %v163_v54  ;;  %v92_v15 = vmul.f32 %v556_v19, %v62_v0  ;;  %v93_v16 = vmul.f32 %v558_v20, %v62_v0 }
  0x98   :  { %228 = vmatpush1.bf16.msra.mxu0 %v162_v55  ;;  %438 = vmatpush1.bf16.msra.mxu1 %v162_v55 }
  0x99   :  { %v114_v57 = vpop.permute.xlu1 %113 }
  0x9a   :  { %v136_v62 = vadd.f32 %v114_v57, %v88_v58  ;;  %v137_v63 = vadd.f32 %v114_v57, %v89_v59 }
  0x9b   :  { %v122_v14 = vpop.permute.xlu0 %121 }
  0x9c   :  { %v152_v5 = vmax.f32 %v136_v62, 0.0  ;;  %v153_v6 = vmax.f32 %v137_v63, 0.0  ;;  %v140_v17 = vadd.f32 %v122_v14, %v92_v15  ;;  %v141_v18 = vadd.f32 %v122_v14, %v93_v16 }
  0x9d   :  { %v118_v1 = vpop.permute.xlu1 %117 }
  0x9e   :  { %v138_v2 = vadd.f32 %v118_v1, %v90_v60  ;;  %v139_v3 = vadd.f32 %v118_v1, %v91_v61  ;;  %v156_v26 = vmax.f32 %v140_v17, 0.0  ;;  %v157_v27 = vmax.f32 %v141_v18, 0.0 }
  0xa0   :  { %v154_v7 = vmax.f32 %v138_v2, 0.0  ;;  %v155_v8 = vmax.f32 %v139_v3, 0.0  ;;  %v186_v44 = vpop.permute.xlu0 %185 }
  0xa2   :  { %v67_v9 = vpop.permute.xlu1 %66  ;;  %v165_v10 = vpack.c.bf16 %v155_v8, %v153_v6  ;;  %v164_v11 = vpack.c.bf16 %v154_v7, %v152_v5 }
  0xa3   :  { %v94_v21 = vmul.f32 %v556_v19, %v67_v9  ;;  %v95_v22 = vmul.f32 %v558_v20, %v67_v9  ;;  %v172_v19 = vld [vmem:[%s621_s2 + $0x20] sm:$0xff]  ;;  %v173_v20 = vld [vmem:[%s621_s2 + $0x28] sm:$0xff] }
  0xa4   :  { %229 = vmatprep.subr.bf16.mxu0 %v165_v10  ;;  %435 = vmatprep.subr.bf16.mxu1 %v165_v10  ;;  %v178_v35 = vpack.c.bf16 %v173_v20, %v172_v19 }
  0xa5   :  { %230 = vmatpush1.bf16.msra.mxu0 %v164_v11  ;;  %439 = vmatpush1.bf16.msra.mxu1 %v164_v11  ;;  %v316_v45 = vpop.permute.xlu0 %315 }
  0xa7   :  { %v126_v23 = vpop.permute.xlu1 %125 }
  0xa8   :  { %v142_v24 = vadd.f32 %v126_v23, %v94_v21  ;;  %v143_v25 = vadd.f32 %v126_v23, %v95_v22 }
  0xa9   :  { %v324_v47 = vpop.permute.xlu0 %323 }
  0xaa   :  { %v158_v28 = vmax.f32 %v142_v24, 0.0  ;;  %v159_v29 = vmax.f32 %v143_v25, 0.0 }
  0xac   :  { %v167_v32 = vpack.c.bf16 %v159_v29, %v157_v27  ;;  %v166_v33 = vpack.c.bf16 %v158_v28, %v156_v26  ;;  %v182_v42 = vpop.permute.xlu1 %181 }
  0xad   :  { %v328_v49 = vpop.permute.xlu0 %327 }
  0xae   :  { %231 = vmatprep.subr.bf16.mxu0 %v167_v32  ;;  %436 = vmatprep.subr.bf16.mxu1 %v167_v32 }
  0xaf   :  { %232 = vmatpush1.bf16.msra.mxu0 %v166_v33  ;;  %440 = vmatpush1.bf16.msra.mxu1 %v166_v33 }
  0xb0   :  { %v190_v43 = vpop.permute.xlu1 %189 }
  0xb1   :  { %v332_v3 = vpop.permute.xlu0 %331 }
  0xb2   :  { %429 = vmatmul.mubr.msk.bf16.vlgmr.msra.gmra.mrb[0].mxu0 %vm212_vm0, %v176_v34  ;;  %431 = vmatmul.mubr.msk.bf16.vlgmr.msra.gmra.mrb[0].mxu1 %vm212_vm0, %v178_v35 }
  0xb3   :  { %267 = vmatprep.mubr.bf16.mxu0 %v488_v4  ;;  %287 = vmatprep.mubr.bf16.mxu1 %v488_v4 }
  0xb4   :  { %v194_v4 = vpop.permute.xlu1 %193 }
  0xb9   :  { %v320_v46 = vpop.permute.xlu1 %319 }
  0xba   :  { %430 = vmatmul.mubr.msk.bf16.gmra.mrb[4].mxu0 %vm212_vm0, %v177_v40  ;;  %432 = vmatmul.mubr.msk.bf16.gmra.mrb[4].mxu1 %vm212_vm0, %v179_v41 }
  0xbe   :  { %v198_v48 = vpop.permute.xlu1 %197 }
  0xc2   :  { %v202_v50 = vpop.permute.xlu1 %201 }
  0xc6   :  { %v206_v5 = vpop.permute.xlu1 %205 }
  0xca   :  { %v210_v37 = vpop.permute.xlu1 %209 }
 0x185   :  { %v259_v51 = vpop.f32.mrb[0].mxu0  ;;  %v279_v52 = vpop.f32.mrb[0].mxu1 }
 0x186   :  { %v260_v53 = vadd.f32 %v259_v51, %v182_v42  ;;  %v261_v54 = vpop.f32.mrb[1].mxu0  ;;  %v281_v55 = vpop.f32.mrb[1].mxu1  ;;  %v280_v14 = vadd.f32 %v279_v52, %v198_v48 }
 0x187   :  { %v262_v56 = vadd.f32 %v261_v54, %v182_v42  ;;  %v263_v57 = vpop.f32.mrb[2].mxu0  ;;  %v283_v58 = vpop.f32.mrb[2].mxu1  ;;  %v282_v21 = vadd.f32 %v281_v55, %v198_v48 }
 0x188   :  { %v298_v59 = vmax.f32 %v260_v53, 0.0  ;;  %v264_v60 = vadd.f32 %v263_v57, %v186_v44  ;;  %v265_v61 = vpop.f32.mrb[3].mxu0  ;;  %v285_v62 = vpop.f32.mrb[3].mxu1  ;;  %v284_v26 = vadd.f32 %v283_v58, %v202_v50  ;;  %v306_v32 = vmax.f32 %v280_v14, 0.0 }
 0x189   :  { %v299_v63 = vmax.f32 %v262_v56, 0.0  ;;  %v266_v0 = vadd.f32 %v265_v61, %v186_v44  ;;  %v286_v31 = vadd.f32 %v285_v62, %v202_v50  ;;  %v307_v36 = vmax.f32 %v282_v21, 0.0  ;;  %v340_v57 = vpop.permute.xlu1 %339 }
 0x18a   :  { %v300_v1 = vmax.f32 %v264_v60, 0.0  ;;  %v346_v6 = vmul.f32 %v316_v45, %v298_v59  ;;  %v308_v41 = vmax.f32 %v284_v26, 0.0  ;;  %v354_v52 = vmul.f32 %v332_v3, %v306_v32 }
 0x18b   :  { %v301_v2 = vmax.f32 %v266_v0, 0.0  ;;  %v347_v8 = vmul.f32 %v316_v45, %v299_v63  ;;  %v336_v45 = vpop.permute.xlu0 %335  ;;  %v355_v54 = vmul.f32 %v332_v3, %v307_v36  ;;  %v389_v26 = vstv %s622_s3 }
 0x18c   :  { %v348_v7 = vmul.f32 %v320_v46, %v300_v1  ;;  %v356_v58 = vmul.f32 %v336_v45, %v308_v41 }
 0x18d   :  { %v349_v9 = vmul.f32 %v320_v46, %v301_v2  ;;  %v269_v10 = vpop.f32.mrb[4].mxu0  ;;  %v289_v11 = vpop.f32.mrb[4].mxu1  ;;  %v309_v46 = vmax.f32 %v286_v31, 0.0 }
 0x18e   :  { %v362_v15 = vadd.f32 %v348_v7, %v346_v6  ;;  %v270_v16 = vadd.f32 %v269_v10, %v190_v43  ;;  %v271_v17 = vpop.f32.mrb[5].mxu0  ;;  %v291_v18 = vpop.f32.mrb[5].mxu1  ;;  %v290_v34 = vadd.f32 %v289_v11, %v206_v5 }
 0x18f   :  { %v375_v22 = vadd.f32 %v349_v9, %v347_v8  ;;  %v272_v23 = vadd.f32 %v271_v17, %v190_v43  ;;  %v273_v24 = vpop.f32.mrb[6].mxu0  ;;  %v293_v25 = vpop.f32.mrb[6].mxu1  ;;  %v292_v39 = vadd.f32 %v291_v18, %v206_v5  ;;  %v357_v60 = vmul.f32 %v336_v45, %v309_v46 }
 0x190   :  { %v302_v27 = vmax.f32 %v270_v16, 0.0  ;;  %v274_v28 = vadd.f32 %v273_v24, %v194_v4  ;;  %v275_v29 = vpop.f32.mrb[7].mxu0  ;;  %v295_v30 = vpop.f32.mrb[7].mxu1  ;;  %v294_v44 = vadd.f32 %v293_v25, %v210_v37  ;;  %v491_v18 = vmov 1966171168  }
 0x191   :  { %v303_v19 = vmax.f32 %v272_v23, 0.0  ;;  %v276_v20 = vadd.f32 %v275_v29, %v194_v4  ;;  %v296_v50 = vadd.f32 %v295_v30, %v210_v37  ;;  %v310_v4 = vmax.f32 %v290_v34, 0.0  ;;  %v344_v1 = vpop.permute.xlu0 %343 }
 0x192   :  { %v350_v33 = vmul.f32 %v324_v47, %v302_v27  ;;  %v304_v35 = vmax.f32 %v274_v28, 0.0  ;;  %v311_v55 = vmax.f32 %v292_v39, 0.0  ;;  %v396_v21 = vunpack.c.l.s4 %v491_v18 }
 0x193   :  { %v351_v38 = vmul.f32 %v324_v47, %v303_v19  ;;  %v305_v40 = vmax.f32 %v276_v20, 0.0  ;;  %v312_v47 = vmax.f32 %v294_v44, 0.0  ;;  %v313_v61 = vmax.f32 %v296_v50, 0.0 }
 0x194   :  { %v363_v42 = vadd.f32 %v362_v15, %v350_v33  ;;  %v352_v43 = vmul.f32 %v328_v49, %v304_v35  ;;  %v358_v63 = vmul.f32 %v340_v57, %v310_v4  ;;  %v359_v2 = vmul.f32 %v340_v57, %v311_v55 }
 0x195   :  { %v376_v48 = vadd.f32 %v375_v22, %v351_v38  ;;  %v353_v51 = vmul.f32 %v328_v49, %v305_v40  ;;  %v360_v49 = vmul.f32 %v344_v1, %v312_v47  ;;  %v361_v7 = vmul.f32 %v344_v1, %v313_v61 }
 0x196   :  { %v364_v53 = vadd.f32 %v363_v42, %v352_v43  ;;  %v397_v27 = vunpack.c.0.s8 %v396_v21 }
 0x197   :  { %v377_v56 = vadd.f32 %v376_v48, %v353_v51 }
 0x198   :  { %v365_v59 = vadd.f32 %v364_v53, %v354_v52  ;;  %v400_v19 = vsub.s32 %v397_v27, %v549_v13 }
 0x199   :  { %v378_v62 = vadd.f32 %v377_v56, %v355_v54 }
 0x19a   :  { %v366_v0 = vadd.f32 %v365_v59, %v356_v58 }
 0x19b   :  { %v379_v5 = vadd.f32 %v378_v62, %v357_v60 }
 0x19c   :  { %v367_v6 = vadd.f32 %v366_v0, %v358_v63 }
 0x19d   :  { %v380_v8 = vadd.f32 %v379_v5, %v359_v2 }
 0x19e   :  { %v368_v9 = vadd.f32 %v367_v6, %v360_v49 }
 0x19f   :  { %v381_v3 = vadd.f32 %v380_v8, %v361_v7 }
 0x1a0   :  { %v369_v10 = vrot.slane %v368_v9, 4 }
 0x1a1   :  { %v382_v11 = vrot.slane %v381_v3, 4 }
 0x1a2   :  { %v370_v14 = vadd.f32 %v369_v10, %v368_v9 }
 0x1a3   :  { %v383_v15 = vadd.f32 %v382_v11, %v381_v3 }
 0x1a4   :  { %v371_v16 = vrot.slane %v370_v14, 2 }
 0x1a5   :  { %v384_v17 = vrot.slane %v383_v15, 2 }
 0x1a6   :  { %v372_v22 = vadd.f32 %v371_v16, %v370_v14 }
 0x1a7   :  { %v385_v23 = vadd.f32 %v384_v17, %v383_v15 }
 0x1a8   :  { %v373_v24 = vrot.slane %v372_v22, 1 }
 0x1a9   :  { %v386_v25 = vrot.slane %v385_v23, 1 }
 0x1aa   :  { %v374_v28 = vadd.f32 %v373_v24, %v372_v22 }
 0x1ab   :  { %v387_v29 = vadd.f32 %v386_v25, %v385_v23 }
 0x1ac   :  { %v390_v30 = vadd.f32 %v389_v26, %v374_v28 }
 0x1ad   :  { %v391_v31 = vadd.f32 %v389_v26, %v387_v29 }
 0x1af   :  { %v394_v20 = vcombine.low %v390_v30, %v391_v31 }
 0x1b1   :  { %v401_v32 = vrot.slane %v394_v20, %v400_v19 }
 0x1b3   :  { %v408_v33 = vrot.slane %v401_v32, %v400_v19 }
 0x1b5   :  { %414 = vst.msk [vmem:[#allocation3] sm:$0x3] %vm412_vm1, %v408_v33 }
 0x1b6   :  { %474 = shalt.err (!%p471_p4)
}
 0x1b7   :  { %s475_s26 = scalar_lea.hbm %s623_s4, 32 }
 0x1b8   :  { %p476_p5 = scmp.ne.s32.totalorder %s623_s4, %s475_s26  ;;  %p479_p6 = scmp.lt.u32.totalorder %s475_s26, %s623_s4 }
 0x1ba   :  { %p481_p7 = pnand %p479_p6, %p476_p5 }
 0x1bc   :  { %484 = shalt.err (!%p481_p7)
}
 0x1bd   :  { %424 = dma.vmem_to_hbm [thread:$0]  %s422_s23, 32, %s623_s4, [#allocation4]  }
 0x1be   :  { %485 = dma.done.wait [#allocation4], 32  }
 0x1bf   :  { %486 = vsyncadd [#allocation4], 4294967264 }
 0x1c0   :  { %428 = vsyncpa [#allocation4], 1 }

</bundles_post_ra>
